<compile_context>
chip_gen: v5e
topology: v5e:2x2
jax: 0.10.0
libtpu: 0.0.40
codegen_flags: <defaults>
</compile_context>

<pallas_src>
import functools

import jax
import jax.numpy as jnp
from jax import lax
from jax.experimental import pallas as pl
from jax.experimental.pallas import tpu as pltpu


class Config:
    num_output = 1
    balance_weights = (1.0,)
    align_corners = False


LANE = 128
SUB = 8                      # sublanes per vreg row group
TILE_R_MAX = 4096            # (4096,128) f32 = 2 MiB/buffer; 2 in x 2 bufs = 8 MiB
PALLAS_MIN_ELEMS = 16384     # below this, fixed launch/grid overhead dominates -> pure jnp


@functools.lru_cache(maxsize=None)
def _num_grid_cores() -> int:
    """2 on megacore chips (v4 / v5p / v7x), 1 on single-TensorCore chips (v5e / v6e)."""
    try:
        kind = jax.devices()[0].device_kind.lower()
    except Exception:
        return 1
    return 2 if any(tag in kind for tag in ("v4", "v5p", "v7")) else 1


def _bce_logits(s, t):
    """Numerically stable BCE-with-logits: max(s,0) - s*t + log1p(exp(-|s|))."""
    return jnp.maximum(s, 0.0) - s * t + jnp.log1p(jnp.exp(-jnp.abs(s)))


def _bce_sum_kernel(s_ref, t_ref, o_ref, *, inner, n_blocks, tile_r, n_rows):
    """One (tile_r, 128) tile of logits-form BCE, folded into an (8, 128) accumulator."""
    c = pl.program_id(0)              # core split (outer, "parallel")
    i = pl.program_id(1)              # row-tile index within this core's range
    g = c * inner + i                 # global row-tile index (may be a clamped duplicate)

    @pl.when(i == 0)
    def _init():
        o_ref[...] = jnp.zeros_like(o_ref)

    s = s_ref[...].astype(jnp.float32)
    t = t_ref[...].astype(jnp.float32)
    loss = _bce_logits(s, t)

    def _accum(val):
        # Layout-free fold: (tile_r,128)->(tile_r/8,8,128), sum leading axis (pure VALU).
        partial = val.reshape(tile_r // SUB, SUB, LANE).sum(axis=0)
        o_ref[...] = o_ref[...] + partial

    block_valid = g < n_blocks                     # clamped duplicate tile -> skip entirely
    fully_inside = (g + 1) * tile_r <= n_rows      # interior tile -> no tail mask needed

    @pl.when(jnp.logical_and(block_valid, fully_inside))
    def _full_tile():
        _accum(loss)

    @pl.when(jnp.logical_and(block_valid, jnp.logical_not(fully_inside)))
    def _tail_tile():
        # Last row-tile may overrun the (rows,128) array; mask garbage rows in value space.
        row = lax.broadcasted_iota(jnp.int32, loss.shape, 0)
        _accum(jnp.where(g * tile_r + row < n_rows, loss, 0.0))


def _bce_sum_pallas(s2, t2, rows):
    """Sum of elementwise logits-BCE over a (rows, 128) view, via a tiled Pallas reduction."""
    assert rows % SUB == 0
    num_cores = _num_grid_cores()

    tile_r = min(TILE_R_MAX, rows)                 # multiple of 8 (rows and TILE_R_MAX are)
    n_blocks = int(pl.cdiv(rows, tile_r))
    inner = int(pl.cdiv(n_blocks, num_cores))
    assert rows + tile_r < 2**31, "int32 row-index masking limit"

    def in_map(c, i):
        # Clamp so a (rare) extra step re-reads a valid tile; the kernel skips
        # accumulation for it via the g < n_blocks guard.
        return (jnp.minimum(c * inner + i, n_blocks - 1), 0)

    kernel = functools.partial(_bce_sum_kernel, inner=inner, n_blocks=n_blocks,
                               tile_r=tile_r, n_rows=rows)

    itemsize = max(s2.dtype.itemsize, t2.dtype.itemsize)
    bytes_in = 2 * 2 * tile_r * LANE * itemsize          # 2 inputs x 2 pipeline buffers
    vmem_limit = int(min(32 << 20, max(8 << 20, bytes_in + (4 << 20))))

    n_elems = rows * LANE
    cost = pl.CostEstimate(
        flops=6 * n_elems,
        transcendentals=2 * n_elems,
        bytes_accessed=n_elems * (s2.dtype.itemsize + t2.dtype.itemsize)
        + num_cores * SUB * LANE * 4,
    )

    out = pl.pallas_call(
        kernel,
        out_shape=jax.ShapeDtypeStruct((num_cores * SUB, LANE), jnp.float32),
        grid_spec=pltpu.PrefetchScalarGridSpec(
            num_scalar_prefetch=0,
            grid=(num_cores, inner),
            in_specs=[pl.BlockSpec((tile_r, LANE), in_map),
                      pl.BlockSpec((tile_r, LANE), in_map)],
            out_specs=pl.BlockSpec((SUB, LANE), lambda c, i: (c, 0)),
        ),
        compiler_params=pltpu.CompilerParams(
            dimension_semantics=("parallel", "arbitrary"),
            vmem_limit_bytes=vmem_limit,
        ),
        cost_estimate=cost,
    )(s2, t2)

    # One final cross-lane reduce over the per-core (8,128) accumulators.
    return jnp.sum(out)


def _bce_loss(score, target):
    """mean(BCE(sigmoid(score), target)) over all elements."""
    if score.shape != target.shape:
        target = jnp.broadcast_to(target, score.shape)
    total = int(score.size)

    # Small-input fast path: launch overhead dominates, pure jnp is strictly faster.
    if total < PALLAS_MIN_ELEMS:
        return jnp.mean(_bce_logits(score.astype(jnp.float32), target.astype(jnp.float32)))

    s_flat = score.reshape(-1)     # free reshape of contiguous NCHW; dtype cast happens in-kernel
    t_flat = target.reshape(-1)

    # Bulk = largest multiple-of-1024 prefix -> (rows, 128) with rows % 8 == 0.
    rows = (total // (LANE * SUB)) * SUB
    n_bulk = rows * LANE
    if n_bulk == total:            # aligned: no copies at all
        s2 = s_flat.reshape(rows, LANE)
        t2 = t_flat.reshape(rows, LANE)
    else:
        s2 = s_flat[:n_bulk].reshape(rows, LANE)
        t2 = t_flat[:n_bulk].reshape(rows, LANE)

    loss_sum = _bce_sum_pallas(s2, t2, rows)

    rem = total - n_bulk
    if rem:                        # < 1024 leftover elements: plain jnp, no padded copies
        sr = s_flat[n_bulk:].astype(jnp.float32)
        tr = t_flat[n_bulk:].astype(jnp.float32)
        loss_sum = loss_sum + jnp.sum(_bce_logits(sr, tr))

    return loss_sum * (1.0 / float(total))


def bce_entropy_forward(score, target):
    """Mirror of BceEntropy.forward with Config.num_output outputs / balance_weights."""
    scores = [score] if Config.num_output == 1 else list(score)

    target = target[:, None, :, :]            # target.unsqueeze(1); float cast happens later

    weights = Config.balance_weights
    assert len(weights) == len(scores)

    # TODO(synk): F.interpolate bilinear resize path (score spatial != target spatial) is not
    # implemented; inputs are assumed size-matched as in the common case.
    loss = jnp.float32(0.0)
    for w, x in zip(weights, scores):
        assert x.shape[2] == target.shape[2] and x.shape[3] == target.shape[3]
        loss = loss + w * _bce_loss(x, target)
    return loss


if __name__ == "__main__":
    key = jax.random.PRNGKey(0)
    k1, k2, k3, k4, k5, k6 = jax.random.split(key, 6)

    def ref_loss(score, target):
        # Pure-JAX reference with PyTorch BCELoss-after-sigmoid semantics.
        p = jax.nn.sigmoid(score.astype(jnp.float32))
        t = target[:, None, :, :].astype(jnp.float32)
        return jnp.mean(-(t * jnp.maximum(jnp.log(p), -100.0)
                          + (1.0 - t) * jnp.maximum(jnp.log1p(-p), -100.0)))

    fwd = jax.jit(bce_entropy_forward)

    # 1) Pallas path (aligned): 2*1*128*128 = 32768 elements >= PALLAS_MIN_ELEMS.
    N, C, H, W = 2, 1, 128, 128
    score = jax.random.normal(k1, (N, C, H, W), dtype=jnp.float32)    # raw logits
    target = jax.random.uniform(k2, (N, H, W), dtype=jnp.float32)     # soft targets in [0, 1]
    loss = fwd(score, target)
    jax.block_until_ready(loss)
    ref = ref_loss(score, target)
    assert jnp.allclose(loss, ref, rtol=1e-5, atol=1e-6), (float(loss), float(ref))

    # 2) Pallas path (unaligned total): 1*1*130*130 = 16900 -> bulk via kernel, tail via jnp.
    score_u = jax.random.normal(k3, (1, 1, 130, 130), dtype=jnp.float32)
    target_u = jax.random.uniform(k4, (1, 130, 130), dtype=jnp.float32)
    loss_u = fwd(score_u, target_u)
    jax.block_until_ready(loss_u)
    ref_u = ref_loss(score_u, target_u)
    assert jnp.allclose(loss_u, ref_u, rtol=1e-5, atol=1e-6), (float(loss_u), float(ref_u))

    # 3) Small shape -> jnp fast path, same semantics.
    score_s = jax.random.normal(k5, (2, 1, 16, 16), dtype=jnp.float32)
    target_s = jax.random.uniform(k6, (2, 16, 16), dtype=jnp.float32)
    loss_s = fwd(score_s, target_s)
    jax.block_until_ready(loss_s)
    ref_s = ref_loss(score_s, target_s)
    assert jnp.allclose(loss_s, ref_s, rtol=1e-5, atol=1e-6), (float(loss_s), float(ref_s))

    print("KERNEL_OK")
</pallas_src>

<mosaic_0001>
module attributes {stable_mosaic.version = 11 : i64} {
  func.func @_bce_sum_kernel(%arg0: i32, %arg1: i32, %arg2: memref<256x128xf32, #tpu.memory_space<vmem>>, %arg3: memref<256x128xf32, #tpu.memory_space<vmem>>, %arg4: memref<8x128xf32, #tpu.memory_space<vmem>>) attributes {dimension_semantics = [#tpu.dimension_semantics<parallel>, #tpu.dimension_semantics<arbitrary>], iteration_bounds = array<i64: 1, 1>, scalar_prefetch = 0 : i64, scratch_operands = 0 : i64, tpu.core_type = #tpu.core_type<tc>, window_params = [{transform_indices = @transform_0, window_bounds = array<i64: 256, 128>}, {transform_indices = @transform_1, window_bounds = array<i64: 256, 128>}, {transform_indices = @transform_2, window_bounds = array<i64: 8, 128>}]} {
    %c1_i32 = arith.constant 1 : i32
    %0 = arith.muli %arg0, %c1_i32 : i32
    %1 = arith.addi %0, %arg1 : i32
    %c0_i32 = arith.constant 0 : i32
    %2 = arith.cmpi eq, %arg1, %c0_i32 : i32
    %3 = arith.extui %2 : i1 to i32
    %c0_i32_0 = arith.constant 0 : i32
    %4 = arith.cmpi ne, %3, %c0_i32_0 : i32
    scf.if %4 {
      %cst_10 = arith.constant 0.000000e+00 : f32
      %28 = vector.broadcast %cst_10 : f32 to vector<8x128xf32>
      %c0_11 = arith.constant 0 : index
      %c0_12 = arith.constant 0 : index
      %29 = vector.load %arg4[%c0_11, %c0_12] : memref<8x128xf32, #tpu.memory_space<vmem>>, vector<8x128xf32>
      tpu.vector_store %arg4[%c0_11, %c0_12], %28 {strides = array<i32>} : memref<8x128xf32, #tpu.memory_space<vmem>>, vector<8x128xf32>,
    } else {
    }
    %c0 = arith.constant 0 : index
    %c0_1 = arith.constant 0 : index
    %5 = vector.load %arg2[%c0, %c0_1] : memref<256x128xf32, #tpu.memory_space<vmem>>, vector<256x128xf32>
    %c0_2 = arith.constant 0 : index
    %c0_3 = arith.constant 0 : index
    %6 = vector.load %arg3[%c0_2, %c0_3] : memref<256x128xf32, #tpu.memory_space<vmem>>, vector<256x128xf32>
    %cst = arith.constant 0.000000e+00 : f32
    %7 = vector.broadcast %cst : f32 to vector<256x128xf32>
    %8 = arith.maximumf %5, %7 : vector<256x128xf32>
    %9 = arith.mulf %5, %6 : vector<256x128xf32>
    %10 = arith.subf %8, %9 : vector<256x128xf32>
    %11 = math.absf %5 : vector<256x128xf32>
    %cst_4 = arith.constant 0.000000e+00 : f32
    %12 = vector.broadcast %cst_4 : f32 to vector<256x128xf32>
    %13 = arith.subf %12, %11 : vector<256x128xf32>
    %14 = math.exp %13 : vector<256x128xf32>
    %15 = math.log1p %14 : vector<256x128xf32>
    %16 = arith.addf %10, %15 : vector<256x128xf32>
    %c1_i32_5 = arith.constant 1 : i32
    %17 = arith.cmpi slt, %1, %c1_i32_5 : i32
    %c1_i32_6 = arith.constant 1 : i32
    %18 = arith.addi %1, %c1_i32_6 : i32
    %c256_i32 = arith.constant 256 : i32
    %19 = arith.muli %18, %c256_i32 : i32
    %c256_i32_7 = arith.constant 256 : i32
    %20 = arith.cmpi sle, %19, %c256_i32_7 : i32
    %21 = arith.andi %17, %20 : i1
    %22 = arith.extui %21 : i1 to i32
    %c0_i32_8 = arith.constant 0 : i32
    %23 = arith.cmpi ne, %22, %c0_i32_8 : i32
    scf.if %23 {
      %28 = vector.shape_cast %16 : vector<256x128xf32> to vector<32x8x128xf32>
      %cst_10 = arith.constant dense<0.000000e+00> : vector<8x128xf32>
      %29 = vector.multi_reduction <add>, %28, %cst_10 [0] : vector<32x8x128xf32> to vector<8x128xf32>
      %c0_11 = arith.constant 0 : index
      %c0_12 = arith.constant 0 : index
      %30 = vector.load %arg4[%c0_11, %c0_12] : memref<8x128xf32, #tpu.memory_space<vmem>>, vector<8x128xf32>
      %31 = arith.addf %30, %29 : vector<8x128xf32>
      %c0_13 = arith.constant 0 : index
      %c0_14 = arith.constant 0 : index
      %32 = vector.load %arg4[%c0_13, %c0_14] : memref<8x128xf32, #tpu.memory_space<vmem>>, vector<8x128xf32>
      tpu.vector_store %arg4[%c0_13, %c0_14], %31 {strides = array<i32>} : memref<8x128xf32, #tpu.memory_space<vmem>>, vector<8x128xf32>,
    } else {
    }
    %true = arith.constant true
    %24 = arith.xori %20, %true : i1
    %25 = arith.andi %17, %24 : i1
    %26 = arith.extui %25 : i1 to i32
    %c0_i32_9 = arith.constant 0 : i32
    %27 = arith.cmpi ne, %26, %c0_i32_9 : i32
    scf.if %27 {
      %28 = tpu.iota {dimensions = array<i32: 0>} : vector<256x128xi32>
      %c256_i32_10 = arith.constant 256 : i32
      %29 = arith.muli %1, %c256_i32_10 : i32
      %30 = vector.broadcast %29 : i32 to vector<256x128xi32>
      %31 = arith.addi %30, %28 : vector<256x128xi32>
      %c256_i32_11 = arith.constant 256 : i32
      %32 = vector.broadcast %c256_i32_11 : i32 to vector<256x128xi32>
      %33 = arith.cmpi slt, %31, %32 : vector<256x128xi32>
      %cst_12 = arith.constant 0.000000e+00 : f32
      %34 = vector.broadcast %cst_12 : f32 to vector<256x128xf32>
      %35 = arith.select %33, %16, %34 : vector<256x128xi1>, vector<256x128xf32>
      %36 = vector.shape_cast %35 : vector<256x128xf32> to vector<32x8x128xf32>
      %cst_13 = arith.constant dense<0.000000e+00> : vector<8x128xf32>
      %37 = vector.multi_reduction <add>, %36, %cst_13 [0] : vector<32x8x128xf32> to vector<8x128xf32>
      %c0_14 = arith.constant 0 : index
      %c0_15 = arith.constant 0 : index
      %38 = vector.load %arg4[%c0_14, %c0_15] : memref<8x128xf32, #tpu.memory_space<vmem>>, vector<8x128xf32>
      %39 = arith.addf %38, %37 : vector<8x128xf32>
      %c0_16 = arith.constant 0 : index
      %c0_17 = arith.constant 0 : index
      %40 = vector.load %arg4[%c0_16, %c0_17] : memref<8x128xf32, #tpu.memory_space<vmem>>, vector<8x128xf32>
      tpu.vector_store %arg4[%c0_16, %c0_17], %39 {strides = array<i32>} : memref<8x128xf32, #tpu.memory_space<vmem>>, vector<8x128xf32>,
    } else {
    }
    return
  }
  func.func @transform_0(%arg0: i32, %arg1: i32) -> (i32, i32) {
    %c1_i32 = arith.constant 1 : i32
    %0 = arith.muli %arg0, %c1_i32 : i32
    %1 = arith.addi %0, %arg1 : i32
    %c0_i32 = arith.constant 0 : i32
    %2 = arith.minsi %1, %c0_i32 : i32
    %c0_i32_0 = arith.constant 0 : i32
    %c0_i32_1 = arith.constant 0 : i32
    return %2, %c0_i32_0 : i32, i32
  }
  func.func @transform_1(%arg0: i32, %arg1: i32) -> (i32, i32) {
    %c1_i32 = arith.constant 1 : i32
    %0 = arith.muli %arg0, %c1_i32 : i32
    %1 = arith.addi %0, %arg1 : i32
    %c0_i32 = arith.constant 0 : i32
    %2 = arith.minsi %1, %c0_i32 : i32
    %c0_i32_0 = arith.constant 0 : i32
    %c0_i32_1 = arith.constant 0 : i32
    return %2, %c0_i32_0 : i32, i32
  }
  func.func @transform_2(%arg0: i32, %arg1: i32) -> (i32, i32) {
    %c0_i32 = arith.constant 0 : i32
    %c0_i32_0 = arith.constant 0 : i32
    return %arg0, %c0_i32 : i32, i32
  }
}

</mosaic_0001>

<bundles_post_ra>
// kernel: bce_entropy_forward.1
= control target key start
LH: loop header
LB: loop body
LE: loop exit
PB: predicated region body
PF: predicated region fallthrough
CT: control target
= control target key end

     0   :  { %7 = vsyncpa [#allocation3], 0  ;;  %s1913_s0 = inlined_call_operand.hbm [shape: f32[256,128], index: 0, kind: input, shape index: {}]   ;;  %s1914_s1 = inlined_call_operand.hbm [shape: f32[256,128], index: 1, kind: input, shape index: {}]   ;;  %s1915_s2 = inlined_call_operand.vmem [shape: f32[8,128], index: 2, kind: output, shape index: {}]  }
   0x1   :  { %s19_s11 = sshll.u32 %s1913_s0, 4  ;;  %s20_s11 = int_to_ptr.hbm [resolvable:$true] %s19_s11 }
   0x2   :  { %8 = vsyncpa [#allocation5], 0  ;;  %s1085_s12 = smov [#allocation2]   ;;  %s38_s16 = sshll.u32 %s1914_s1, 4  ;;  %s39_s16 = int_to_ptr.hbm [resolvable:$true] %s38_s16 }
   0x3   :  { %s21_s13 = sshll.u32 %s1085_s12, 4  ;;  %s1086_s17 = smov 128   ;;  %s22_s13 = int_to_ptr.vmem [resolvable:$true] %s21_s13 }
   0x4   :  { %s1087_s18 = smov 8   ;;  %s1088_s19 = smov [#allocation4]  }
   0x5   :  { %27 = dma.hbm_to_vmem [thread:$0]  %s20_s11, 4096, %s22_s13, [#allocation3], %s1086_s17, %s1086_s17, %s1087_s18  }
   0x6   :  { %s40_s20 = sshll.u32 %s1088_s19, 4  ;;  %s41_s20 = int_to_ptr.vmem [resolvable:$true] %s40_s20 }
   0x7   :  { %46 = dma.hbm_to_vmem [thread:$0]  %s39_s16, 4096, %s41_s20, [#allocation5], %s1086_s17, %s1086_s17, %s1087_s18  }
   0x8   :  { %1081 = dma.done.wait [#allocation3], 4096  }
   0x9   :  { %1082 = vsyncadd [#allocation3], 4294963200 }
   0xa   :  { %1083 = dma.done.wait [#allocation5], 4096  }
   0xb   :  { %1084 = vsyncadd [#allocation5], 4294963200  ;;  %v1110_v0 = vld [vmem:[#allocation2] sm:$0xff]  ;;  %v1112_v1 = vld [vmem:[#allocation2 + $0x8] sm:$0xff] }
   0xc   :  { %1935 = vst [vmem:[#allocation8_spill] sm:$0xff] %v1110_v0  ;;  %v1114_v2 = vld [vmem:[#allocation2 + $0x10] sm:$0xff]  ;;  %v1116_v3 = vld [vmem:[#allocation2 + $0x18] sm:$0xff]  ;;  %v1118_v4 = vld [vmem:[#allocation2 + $0x20] sm:$0xff]  ;;  %v133_v10 = vmax.f32 %v1110_v0, 0.0  ;;  %v134_v14 = vmax.f32 %v1112_v1, 0.0 }
   0xd   :  { %1936 = vst [vmem:[#allocation9_spill] sm:$0xff] %v1112_v1  ;;  %v1120_v5 = vld [vmem:[#allocation2 + $0x28] sm:$0xff]  ;;  %v1122_v6 = vld [vmem:[#allocation2 + $0x30] sm:$0xff]  ;;  %v1124_v7 = vld [vmem:[#allocation2 + $0x38] sm:$0xff]  ;;  %v135_v15 = vmax.f32 %v1114_v2, 0.0 }
   0xe   :  { %1937 = vst [vmem:[#allocation10_spill] sm:$0xff] %v1114_v2  ;;  %v1126_v8 = vld [vmem:[#allocation2 + $0x40] sm:$0xff]  ;;  %v1128_v9 = vld [vmem:[#allocation2 + $0x48] sm:$0xff]  ;;  %v1131_v11 = vld [vmem:[#allocation2 + $0x50] sm:$0xff] }
   0xf   :  { %1938 = vst [vmem:[#allocation11_spill] sm:$0xff] %v1116_v3  ;;  %v1133_v12 = vld [vmem:[#allocation2 + $0x58] sm:$0xff]  ;;  %v1135_v13 = vld [vmem:[#allocation2 + $0x60] sm:$0xff]  ;;  %v1140_v17 = vld [vmem:[#allocation2 + $0x68] sm:$0xff] }
  0x10   :  { %v1142_v18 = vld [vmem:[#allocation2 + $0x70] sm:$0xff]  ;;  %v1144_v19 = vld [vmem:[#allocation2 + $0x78] sm:$0xff]  ;;  %v1149_v23 = vld [vmem:[#allocation2 + $0x80] sm:$0xff] }
  0x11   :  { %v1151_v24 = vld [vmem:[#allocation2 + $0x88] sm:$0xff]  ;;  %v1153_v25 = vld [vmem:[#allocation2 + $0x90] sm:$0xff]  ;;  %v1158_v29 = vld [vmem:[#allocation2 + $0x98] sm:$0xff] }
  0x12   :  { %v1160_v30 = vld [vmem:[#allocation2 + $0xa0] sm:$0xff]  ;;  %v1162_v31 = vld [vmem:[#allocation2 + $0xa8] sm:$0xff]  ;;  %v1167_v35 = vld [vmem:[#allocation2 + $0xb0] sm:$0xff] }
  0x13   :  { %v1169_v36 = vld [vmem:[#allocation2 + $0xb8] sm:$0xff]  ;;  %v1171_v37 = vld [vmem:[#allocation2 + $0xc0] sm:$0xff]  ;;  %v1176_v42 = vld [vmem:[#allocation2 + $0xc8] sm:$0xff] }
  0x14   :  { %v101_v38 = vld [vmem:[#allocation4] sm:$0xff]  ;;  %v1178_v43 = vld [vmem:[#allocation2 + $0xd0] sm:$0xff]  ;;  %v1180_v44 = vld [vmem:[#allocation2 + $0xd8] sm:$0xff] }
  0x15   :  { %v102_v45 = vld [vmem:[#allocation4 + $0x8] sm:$0xff]  ;;  %v1185_v49 = vld [vmem:[#allocation2 + $0xe0] sm:$0xff]  ;;  %v1189_v51 = vld [vmem:[#allocation2 + $0xf0] sm:$0xff]  ;;  %v165_v62 = vmul.f32 %v101_v38, %v1110_v0 }
  0x16   :  { %v1187_v50 = vld [vmem:[#allocation2 + $0xe8] sm:$0xff]  ;;  %1940 = vst [vmem:[#allocation13_spill] sm:$0xff] %v1189_v51  ;;  %v103_v52 = vld [vmem:[#allocation4 + $0x10] sm:$0xff]  ;;  %v1194_v56 = vld [vmem:[#allocation2 + $0xf8] sm:$0xff]  ;;  %v166_v46 = vmul.f32 %v102_v45, %v1112_v1 }
  0x17   :  { %1939 = vst [vmem:[#allocation12_spill] sm:$0xff] %v1187_v50  ;;  %v104_v57 = vld [vmem:[#allocation4 + $0x18] sm:$0xff]  ;;  %v105_v58 = vld [vmem:[#allocation4 + $0x20] sm:$0xff]  ;;  %v106_v63 = vld [vmem:[#allocation4 + $0x28] sm:$0xff]  ;;  %v167_v39 = vmul.f32 %v103_v52, %v1114_v2  ;;  %v1217_v26 = vsub.f32 %v133_v10, %v165_v62 }
  0x18   :  { %1941 = vst [vmem:[#allocation14_spill] sm:$0xff] %v1194_v56  ;;  %v107_v48 = vld [vmem:[#allocation4 + $0x30] sm:$0xff]  ;;  %v108_v47 = vld [vmem:[#allocation4 + $0x38] sm:$0xff]  ;;  %v109_v41 = vld [vmem:[#allocation4 + $0x40] sm:$0xff]  ;;  %v168_v55 = vmul.f32 %v104_v57, %v1116_v3  ;;  %v169_v45 = vmul.f32 %v105_v58, %v1118_v4  ;;  %v170_v61 = vmul.f32 %v106_v63, %v1120_v5  ;;  %v1224_v63 = vsub.f32 %v134_v14, %v166_v46 }
  0x19   :  { %v110_v40 = vld [vmem:[#allocation4 + $0x48] sm:$0xff]  ;;  %v111_v59 = vld [vmem:[#allocation4 + $0x50] sm:$0xff]  ;;  %v112_v34 = vld [vmem:[#allocation4 + $0x58] sm:$0xff]  ;;  %v171_v38 = vmul.f32 %v107_v48, %v1122_v6  ;;  %v172_v52 = vmul.f32 %v108_v47, %v1124_v7  ;;  %1942 = vst [vmem:[#allocation15_spill] sm:$0xff] %v1217_v26  ;;  %v173_v58 = vmul.f32 %v109_v41, %v1126_v8  ;;  %v1231_v41 = vsub.f32 %v135_v15, %v167_v39 }
  0x1a   :  { %v113_v33 = vld [vmem:[#allocation4 + $0x60] sm:$0xff]  ;;  %v114_v53 = vld [vmem:[#allocation4 + $0x68] sm:$0xff]  ;;  %v115_v28 = vld [vmem:[#allocation4 + $0x70] sm:$0xff]  ;;  %v174_v32 = vmul.f32 %v110_v40, %v1128_v9  ;;  %v175_v21 = vmul.f32 %v111_v59, %v1131_v11  ;;  %1943 = vst [vmem:[#allocation16_spill] sm:$0xff] %v1224_v63  ;;  %v176_v16 = vmul.f32 %v112_v34, %v1133_v12  ;;  %v1945_v63 = vmax.f32 %v1116_v3, 0.0 }
  0x1b   :  { %v116_v27 = vld [vmem:[#allocation4 + $0x78] sm:$0xff]  ;;  %v117_v60 = vld [vmem:[#allocation4 + $0x80] sm:$0xff]  ;;  %v118_v54 = vld [vmem:[#allocation4 + $0x88] sm:$0xff]  ;;  %v177_v10 = vmul.f32 %v113_v33, %v1135_v13  ;;  %v178_v62 = vmul.f32 %v114_v53, %v1140_v17  ;;  %1944 = vst [vmem:[#allocation17_spill] sm:$0xff] %v1231_v41  ;;  %v179_v56 = vmul.f32 %v115_v28, %v1142_v18  ;;  %v1947_v41 = vmax.f32 %v1118_v4, 0.0 }
  0x1c   :  { %v119_v22 = vld [vmem:[#allocation4 + $0x90] sm:$0xff]  ;;  %v120_v57 = vld [vmem:[#allocation4 + $0x98] sm:$0xff]  ;;  %v121_v48 = vld [vmem:[#allocation4 + $0xa0] sm:$0xff]  ;;  %v180_v14 = vmul.f32 %v116_v27, %v1144_v19  ;;  %v181_v46 = vmul.f32 %v117_v60, %v1149_v23  ;;  %v1238_v34 = vsub.f32 %v1945_v63, %v168_v55  ;;  %v182_v2 = vmul.f32 %v118_v54, %v1151_v24 }
  0x1d   :  { %v122_v20 = vld [vmem:[#allocation4 + $0xa8] sm:$0xff]  ;;  %v123_v47 = vld [vmem:[#allocation4 + $0xb0] sm:$0xff]  ;;  %v124_v40 = vld [vmem:[#allocation4 + $0xb8] sm:$0xff]  ;;  %v183_v15 = vmul.f32 %v119_v22, %v1153_v25  ;;  %v184_v39 = vmul.f32 %v120_v57, %v1158_v29  ;;  %v1245_v28 = vsub.f32 %v1947_v41, %v169_v45  ;;  %v185_v60 = vmul.f32 %v121_v48, %v1160_v30 }
  0x1e   :  { %v125_v26 = vld [vmem:[#allocation4 + $0xc0] sm:$0xff]  ;;  %v126_v59 = vld [vmem:[#allocation4 + $0xc8] sm:$0xff]  ;;  %1946 = vst [vmem:[#allocation18_spill] sm:$0xff] %v1238_v34  ;;  %v127_v33 = vld [vmem:[#allocation4 + $0xd0] sm:$0xff]  ;;  %v186_v55 = vmul.f32 %v122_v20, %v1162_v31  ;;  %v187_v63 = vmul.f32 %v123_v47, %v1167_v35  ;;  %v1949_v34 = vmax.f32 %v1120_v5, 0.0  ;;  %v188_v22 = vmul.f32 %v124_v40, %v1169_v36 }
  0x1f   :  { %v128_v0 = vld [vmem:[#allocation4 + $0xd8] sm:$0xff]  ;;  %v129_v53 = vld [vmem:[#allocation4 + $0xe0] sm:$0xff]  ;;  %1948 = vst [vmem:[#allocation19_spill] sm:$0xff] %v1245_v28  ;;  %v130_v27 = vld [vmem:[#allocation4 + $0xe8] sm:$0xff]  ;;  %v189_v54 = vmul.f32 %v125_v26, %v1171_v37  ;;  %v190_v57 = vmul.f32 %v126_v59, %v1176_v42  ;;  %v1950_v45 = vmax.f32 %v1122_v6, 0.0  ;;  %v191_v48 = vmul.f32 %v127_v33, %v1178_v43 }
  0x20   :  { %v131_v1 = vld [vmem:[#allocation4 + $0xf0] sm:$0xff]  ;;  %v1252_v3 = vsub.f32 %v1949_v34, %v170_v61  ;;  %v192_v20 = vmul.f32 %v128_v0, %v1180_v44  ;;  %v193_v47 = vmul.f32 %v129_v53, %v1185_v49  ;;  %v1951_v28 = vmax.f32 %v1124_v7, 0.0 }
  0x21   :  { %v1259_v41 = vsub.f32 %v1950_v45, %v171_v38  ;;  %v1269_v40 = vmul.f32 %v130_v27, %v1187_v50  ;;  %v1272_v26 = vmul.f32 %v131_v1, %v1189_v51  ;;  %v1954_v59 = vmax.f32 %v1126_v8, 0.0 }
  0x22   :  { %v1266_v61 = vsub.f32 %v1951_v28, %v172_v52  ;;  %v1956_v34 = vmax.f32 %v1128_v9, 0.0  ;;  %v1958_v0 = vmax.f32 %v1131_v11, 0.0  ;;  %v1960_v52 = vmax.f32 %v1133_v12, 0.0 }
  0x23   :  { %1952 = vst [vmem:[#allocation20_spill] sm:$0xff] %v1269_v40  ;;  %v1276_v38 = vsub.f32 %v1954_v59, %v173_v58  ;;  %v1962_v27 = vmax.f32 %v1135_v13, 0.0  ;;  %v1964_v45 = vmax.f32 %v1140_v17, 0.0  ;;  %v1966_v59 = vmax.f32 %v1142_v18, 0.0  ;;  %v1976_v40 = vld [vmem:[#allocation11_spill] sm:$0xff] }
  0x24   :  { %1953 = vst [vmem:[#allocation21_spill] sm:$0xff] %v1272_v26  ;;  %v1280_v33 = vsub.f32 %v1956_v34, %v174_v32  ;;  %v1284_v53 = vsub.f32 %v1958_v0, %v175_v21  ;;  %v1288_v28 = vsub.f32 %v1960_v52, %v176_v16  ;;  %v1968_v34 = vmax.f32 %v1144_v19, 0.0  ;;  %v1972_v52 = vld [vmem:[#allocation9_spill] sm:$0xff] }
  0x25   :  { %1955 = vst [vmem:[#allocation22_spill] sm:$0xff] %v1276_v38  ;;  %v1292_v1 = vsub.f32 %v1962_v27, %v177_v10  ;;  %v1296_v58 = vsub.f32 %v1964_v45, %v178_v62  ;;  %v1300_v32 = vsub.f32 %v1966_v59, %v179_v56  ;;  %v1970_v0 = vmax.f32 %v1149_v23, 0.0  ;;  %v1975_v62 = vld [vmem:[#allocation10_spill] sm:$0xff] }
  0x26   :  { %1957 = vst [vmem:[#allocation23_spill] sm:$0xff] %v1280_v33  ;;  %v1304_v21 = vsub.f32 %v1968_v34, %v180_v14  ;;  %v230_v26 = vand.u32 2147483647, %v1972_v52  ;;  %v1973_v10 = vmax.f32 %v1151_v24, 0.0  ;;  %v231_v45 = vand.u32 2147483647, %v1975_v62 }
  0x27   :  { %1959 = vst [vmem:[#allocation24_spill] sm:$0xff] %v1284_v53  ;;  %v1308_v16 = vsub.f32 %v1970_v0, %v181_v46  ;;  %v233_v56 = vand.u32 2147483647, %v1118_v4  ;;  %v1977_v59 = vmax.f32 %v1153_v25, 0.0  ;;  %v234_v34 = vand.u32 2147483647, %v1120_v5 }
  0x28   :  { %1961 = vst [vmem:[#allocation25_spill] sm:$0xff] %v1288_v28  ;;  %v1313_v27 = vsub.f32 %v1973_v10, %v182_v2  ;;  %v235_v46 = vand.u32 2147483647, %v1122_v6  ;;  %v236_v0 = vand.u32 2147483647, %v1124_v7  ;;  %v1979_v52 = vmax.f32 %v1158_v29, 0.0 }
  0x29   :  { %1963 = vst [vmem:[#allocation26_spill] sm:$0xff] %v1292_v1  ;;  %v1320_v14 = vsub.f32 %v1977_v59, %v183_v15  ;;  %v237_v10 = vand.u32 2147483647, %v1126_v8  ;;  %v239_v4 = vand.u32 2147483647, %v1131_v11  ;;  %v1981_v62 = vmax.f32 %v1160_v30, 0.0 }
  0x2a   :  { %1965 = vst [vmem:[#allocation27_spill] sm:$0xff] %v1296_v58  ;;  %v232_v58 = vand.u32 2147483647, %v1976_v40  ;;  %v1327_v2 = vsub.f32 %v1979_v52, %v184_v39  ;;  %v238_v40 = vand.u32 2147483647, %v1128_v9  ;;  %v1983_v59 = vmax.f32 %v1162_v31, 0.0 }
  0x2b   :  { %1967 = vst [vmem:[#allocation28_spill] sm:$0xff] %v1300_v32  ;;  %v1334_v15 = vsub.f32 %v1981_v62, %v185_v60  ;;  %v240_v5 = vand.u32 2147483647, %v1133_v12  ;;  %v241_v6 = vand.u32 2147483647, %v1135_v13  ;;  %v1985_v52 = vld [vmem:[#allocation8_spill] sm:$0xff] }
  0x2c   :  { %1969 = vst [vmem:[#allocation29_spill] sm:$0xff] %v1304_v21  ;;  %v242_v7 = vand.u32 2147483647, %v1140_v17  ;;  %v1341_v39 = vsub.f32 %v1983_v59, %v186_v55  ;;  %v243_v8 = vand.u32 2147483647, %v1142_v18  ;;  %v1987_v60 = vmax.f32 %v1167_v35, 0.0 }
  0x2d   :  { %1971 = vst [vmem:[#allocation30_spill] sm:$0xff] %v1308_v16  ;;  %v244_v9 = vand.u32 2147483647, %v1144_v19  ;;  %v1986_v11 = vand.u32 2147483647, %v1985_v52  ;;  %v262_v17 = vsub.f32 0.0, %v230_v26 }
  0x2e   :  { %1974 = vst [vmem:[#allocation9_spill] sm:$0xff] %v1313_v27  ;;  %v1349_v62 = vsub.f32 %v1987_v60, %v187_v63  ;;  %v245_v12 = vand.u32 2147483647, %v1149_v23  ;;  %v246_v13 = vand.u32 2147483647, %v1151_v24  ;;  %v263_v59 = vsub.f32 0.0, %v231_v45 }
  0x2f   :  { %1978 = vst [vmem:[#allocation10_spill] sm:$0xff] %v1320_v14  ;;  %v247_v18 = vand.u32 2147483647, %v1153_v25  ;;  %v248_v19 = vand.u32 2147483647, %v1158_v29  ;;  %v1991_v52 = vmax.f32 %v1171_v37, 0.0 }
  0x30   :  { %1980 = vst [vmem:[#allocation11_spill] sm:$0xff] %v1327_v2  ;;  %v261_v2 = vsub.f32 0.0, %v1986_v11  ;;  %v249_v63 = vand.u32 2147483647, %v1160_v30  ;;  %v250_v23 = vand.u32 2147483647, %v1162_v31 }
  0x31   :  { %1982 = vst [vmem:[#allocation31_spill] sm:$0xff] %v1334_v15  ;;  %v1989_v15 = vmax.f32 %v1169_v36, 0.0  ;;  %v1361_v11 = vsub.f32 %v1991_v52, %v189_v54  ;;  %v264_v60 = vsub.f32 0.0, %v232_v58  ;;  %v1993_v24 = vmax.f32 %v1176_v42, 0.0 }
  0x32   :  { %1984 = vst [vmem:[#allocation32_spill] sm:$0xff] %v1341_v39  ;;  %v293_v25 = vmul.f32 1.442695, %v261_v2  ;;  %v1995_v29 = vmax.f32 %v1178_v43, 0.0  ;;  %v252_v54 = vand.u32 2147483647, %v1169_v36 }
  0x33   :  { %1988 = vst [vmem:[#allocation8_spill] sm:$0xff] %v1349_v62  ;;  %v1355_v55 = vsub.f32 %v1989_v15, %v188_v22  ;;  %v1367_v26 = vsub.f32 %v1993_v24, %v190_v57  ;;  %v251_v22 = vand.u32 2147483647, %v1167_v35  ;;  %v265_v15 = vsub.f32 0.0, %v233_v56 }
  0x34   :  { %1992 = vst [vmem:[#allocation34_spill] sm:$0xff] %v1361_v11  ;;  %v1372_v45 = vsub.f32 %v1995_v29, %v191_v48  ;;  %v266_v52 = vsub.f32 0.0, %v234_v34  ;;  %v295_v11 = vmul.f32 1.442695, %v262_v17  ;;  %v1997_v30 = vmax.f32 %v1180_v44, 0.0 }
  0x35   :  { %1990 = vst [vmem:[#allocation33_spill] sm:$0xff] %v1355_v55  ;;  %v253_v58 = vand.u32 2147483647, %v1171_v37  ;;  %v267_v57 = vsub.f32 0.0, %v235_v46  ;;  %v297_v24 = vmul.f32 1.442695, %v263_v59  ;;  %904 = vpow2.f32 %v293_v25 }
  0x36   :  { %1994 = vst [vmem:[#allocation35_spill] sm:$0xff] %v1367_v26  ;;  %v1377_v31 = vsub.f32 %v1997_v30, %v192_v20  ;;  %v1999_v35 = vmax.f32 %v1185_v49, 0.0  ;;  %v254_v2 = vand.u32 2147483647, %v1176_v42  ;;  %v268_v48 = vsub.f32 0.0, %v236_v0 }
  0x37   :  { %1996 = vst [vmem:[#allocation36_spill] sm:$0xff] %v1372_v45  ;;  %v299_v29 = vmul.f32 1.442695, %v264_v60  ;;  %v255_v36 = vand.u32 2147483647, %v1178_v43  ;;  %v269_v34 = vsub.f32 0.0, %v237_v10  ;;  %906 = vpow2.f32 %v295_v11 }
  0x38   :  { %1998 = vst [vmem:[#allocation37_spill] sm:$0xff] %v1377_v31  ;;  %v1382_v56 = vsub.f32 %v1999_v35, %v193_v47  ;;  %v301_v17 = vmul.f32 1.442695, %v265_v15  ;;  %v256_v20 = vand.u32 2147483647, %v1180_v44  ;;  %v270_v30 = vsub.f32 0.0, %v238_v40 }
  0x39   :  { %v303_v37 = vmul.f32 1.442695, %v266_v52  ;;  %v257_v46 = vand.u32 2147483647, %v1185_v49  ;;  %v271_v59 = vsub.f32 0.0, %v239_v4  ;;  %908 = vpow2.f32 %v297_v24  ;;  %v2001_v15 = vld [vmem:[#allocation14_spill] sm:$0xff] }
  0x3a   :  { %2000 = vst [vmem:[#allocation38_spill] sm:$0xff] %v1382_v56  ;;  %v305_v47 = vmul.f32 1.442695, %v267_v57  ;;  %v258_v35 = vand.u32 2147483647, %v1187_v50  ;;  %v272_v42 = vsub.f32 0.0, %v240_v5  ;;  %910 = vpow2.f32 %v299_v29 }
  0x3b   :  { %v307_v0 = vmul.f32 1.442695, %v268_v48  ;;  %v259_v43 = vand.u32 2147483647, %v1189_v51  ;;  %v273_v10 = vsub.f32 0.0, %v241_v6  ;;  %912 = vpow2.f32 %v301_v17  ;;  %v1391_v25 = vpop.eup %904 }
  0x3c   :  { %v309_v60 = vmul.f32 1.442695, %v269_v34  ;;  %v260_v44 = vand.u32 2147483647, %v2001_v15  ;;  %v274_v40 = vsub.f32 0.0, %v242_v7  ;;  %914 = vpow2.f32 %v303_v37 }
  0x3d   :  { %v311_v11 = vmul.f32 1.442695, %v270_v30  ;;  %v275_v49 = vsub.f32 0.0, %v243_v8  ;;  %v276_v4 = vsub.f32 0.0, %v244_v9  ;;  %916 = vpow2.f32 %v305_v47  ;;  %v1393_v57 = vpop.eup %906 }
  0x3e   :  { %v313_v52 = vmul.f32 1.442695, %v271_v59  ;;  %v277_v5 = vsub.f32 0.0, %v245_v12  ;;  %v278_v24 = vsub.f32 0.0, %v246_v13  ;;  %918 = vpow2.f32 %v307_v0 }
  0x3f   :  { %v315_v48 = vmul.f32 1.442695, %v272_v42  ;;  %v1395_v6 = vpop.eup %908  ;;  %v279_v29 = vsub.f32 0.0, %v247_v18  ;;  %v280_v34 = vsub.f32 0.0, %v248_v19  ;;  %920 = vpow2.f32 %v309_v60 }
  0x40   :  { %v317_v7 = vmul.f32 1.442695, %v273_v10  ;;  %v1397_v17 = vpop.eup %910  ;;  %v281_v30 = vsub.f32 0.0, %v249_v63  ;;  %v282_v37 = vsub.f32 0.0, %v250_v23  ;;  %922 = vpow2.f32 %v311_v11 }
  0x41   :  { %v319_v8 = vmul.f32 1.442695, %v274_v40  ;;  %v1399_v9 = vpop.eup %912  ;;  %v283_v59 = vsub.f32 0.0, %v251_v22  ;;  %v284_v47 = vsub.f32 0.0, %v252_v54  ;;  %924 = vpow2.f32 %v313_v52 }
  0x42   :  { %v321_v12 = vmul.f32 1.442695, %v275_v49  ;;  %v1401_v13 = vpop.eup %914  ;;  %v285_v42 = vsub.f32 0.0, %v253_v58  ;;  %v286_v0 = vsub.f32 0.0, %v254_v2  ;;  %926 = vpow2.f32 %v315_v48 }
  0x43   :  { %v323_v18 = vmul.f32 1.442695, %v276_v4  ;;  %v1403_v19 = vpop.eup %916  ;;  %v287_v10 = vsub.f32 0.0, %v255_v36  ;;  %v288_v60 = vsub.f32 0.0, %v256_v20  ;;  %928 = vpow2.f32 %v317_v7 }
  0x44   :  { %v325_v63 = vmul.f32 1.442695, %v277_v5  ;;  %v1405_v23 = vpop.eup %918  ;;  %v289_v40 = vsub.f32 0.0, %v257_v46  ;;  %v290_v11 = vsub.f32 0.0, %v258_v35  ;;  %930 = vpow2.f32 %v319_v8 }
  0x45   :  { %v327_v22 = vmul.f32 1.442695, %v278_v24  ;;  %v1407_v54 = vpop.eup %920  ;;  %v291_v49 = vsub.f32 0.0, %v259_v43  ;;  %v292_v52 = vsub.f32 0.0, %v260_v44  ;;  %932 = vpow2.f32 %v321_v12 }
  0x46   :  { %v329_v58 = vmul.f32 1.442695, %v279_v29  ;;  %v1409_v2 = vpop.eup %922  ;;  %934 = vpow2.f32 %v323_v18  ;;  %v331_v4 = vmul.f32 1.442695, %v280_v34  ;;  %v333_v36 = vmul.f32 1.442695, %v281_v30 }
  0x47   :  { %v360_v20 = vmul.f32 -0.5, %v1391_v25  ;;  %v1412_v5 = vpop.eup %924  ;;  %936 = vpow2.f32 %v325_v63  ;;  %v335_v46 = vmul.f32 1.442695, %v282_v37  ;;  %v337_v35 = vmul.f32 1.442695, %v283_v59 }
  0x48   :  { %v339_v48 = vmul.f32 1.442695, %v284_v47  ;;  %v1414_v24 = vpop.eup %926  ;;  %938 = vpow2.f32 %v327_v22  ;;  %v341_v43 = vmul.f32 1.442695, %v285_v42  ;;  %v343_v44 = vmul.f32 1.442695, %v286_v0 }
  0x49   :  { %v369_v29 = vmul.f32 -0.5, %v1393_v57  ;;  %v1417_v7 = vpop.eup %928  ;;  %940 = vpow2.f32 %v329_v58  ;;  %v345_v34 = vmul.f32 1.442695, %v287_v10  ;;  %v347_v30 = vmul.f32 1.442695, %v288_v60 }
  0x4a   :  { %v349_v8 = vmul.f32 1.442695, %v289_v40  ;;  %v1419_v12 = vpop.eup %930  ;;  %942 = vpow2.f32 %v331_v4  ;;  %v351_v18 = vmul.f32 1.442695, %v290_v11  ;;  %v361_v37 = vadd.f32 1.0, %v360_v20 }
  0x4b   :  { %v378_v59 = vmul.f32 -0.5, %v1395_v6  ;;  %v1422_v47 = vpop.eup %932  ;;  %944 = vpow2.f32 %v333_v36  ;;  %v353_v42 = vmul.f32 1.442695, %v291_v49  ;;  %v355_v0 = vmul.f32 1.442695, %v292_v52 }
  0x4c   :  { %v387_v63 = vmul.f32 -0.5, %v1397_v17  ;;  %v1425_v22 = vpop.eup %934  ;;  %946 = vpow2.f32 %v335_v46  ;;  %v357_v10 = vadd.f32 1.0, %v1391_v25  ;;  %v370_v40 = vadd.f32 1.0, %v369_v29 }
  0x4d   :  { %v1429_v58 = vpop.eup %936  ;;  %948 = vpow2.f32 %v337_v35  ;;  %v366_v11 = vadd.f32 1.0, %v1393_v57  ;;  %v396_v49 = vmul.f32 -0.5, %v1399_v9  ;;  %v1437_v36 = vmul.f32 %v1391_v25, %v361_v37 }
  0x4e   :  { %v1434_v52 = vpop.eup %938  ;;  %950 = vpow2.f32 %v339_v48  ;;  %v375_v20 = vadd.f32 1.0, %v1395_v6  ;;  %v379_v46 = vadd.f32 1.0, %v378_v59  ;;  %v388_v29 = vadd.f32 1.0, %v387_v63 }
  0x4f   :  { %v1440_v60 = vpop.eup %940  ;;  %952 = vpow2.f32 %v341_v43  ;;  %v405_v15 = vmul.f32 -0.5, %v1401_v13  ;;  %v1447_v56 = vmul.f32 %v1393_v57, %v370_v40  ;;  %v384_v48 = vadd.f32 1.0, %v1397_v17 }
  0x50   :  { %v1444_v4 = vpop.eup %942  ;;  %954 = vpow2.f32 %v343_v44  ;;  %v393_v43 = vadd.f32 1.0, %v1399_v9  ;;  %v397_v59 = vadd.f32 1.0, %v396_v49  ;;  %v414_v63 = vmul.f32 -0.5, %v1403_v19 }
  0x51   :  { %v1451_v51 = vpop.eup %944  ;;  %956 = vpow2.f32 %v345_v34  ;;  %v1458_v44 = vmul.f32 %v1395_v6, %v379_v46  ;;  %v399_v40 = vand.u32 2147483647, %v1399_v9  ;;  %v423_v31 = vmul.f32 -0.5, %v1405_v23 }
  0x52   :  { %v1455_v35 = vpop.eup %946  ;;  %958 = vpow2.f32 %v347_v30  ;;  %v1465_v34 = vmul.f32 %v1397_v17, %v388_v29  ;;  %v402_v49 = vadd.f32 1.0, %v1401_v13  ;;  %v406_v37 = vadd.f32 1.0, %v405_v15 }
  0x53   :  { %2002 = vst [vmem:[#allocation39_spill] sm:$0xff] %v1455_v35  ;;  %v1462_v50 = vpop.eup %948  ;;  %960 = vpow2.f32 %v349_v8  ;;  %v408_v30 = vand.u32 2147483647, %v1401_v13  ;;  %v411_v46 = vadd.f32 1.0, %v1403_v19  ;;  %v432_v26 = vmul.f32 -0.5, %v1407_v54 }
  0x54   :  { %2003 = vst [vmem:[#allocation40_spill] sm:$0xff] %v1462_v50  ;;  %v1468_v45 = vpop.eup %950  ;;  %962 = vpow2.f32 %v351_v18  ;;  %v1476_v8 = vmul.f32 %v1399_v9, %v397_v59  ;;  %v415_v29 = vadd.f32 1.0, %v414_v63  ;;  %v441_v62 = vmul.f32 -0.5, %v1409_v2 }
  0x55   :  { %2004 = vst [vmem:[#allocation41_spill] sm:$0xff] %v1468_v45  ;;  %v1473_v55 = vpop.eup %952  ;;  %964 = vpow2.f32 %v353_v42  ;;  %v417_v15 = vand.u32 2147483647, %v1403_v19  ;;  %v420_v18 = vadd.f32 1.0, %v1405_v23  ;;  %v424_v14 = vadd.f32 1.0, %v423_v31 }
  0x56   :  { %2005 = vst [vmem:[#allocation42_spill] sm:$0xff] %v1473_v55  ;;  %v1479_v39 = vpop.eup %954  ;;  %966 = vpow2.f32 %v355_v0  ;;  %v1486_v16 = vmul.f32 %v1401_v13, %v406_v37  ;;  %v426_v9 = vand.u32 2147483647, %v1405_v23  ;;  %v450_v42 = vmul.f32 -0.5, %v1412_v5 }
  0x57   :  { %2006 = vst [vmem:[#allocation43_spill] sm:$0xff] %v1479_v39  ;;  %v1483_v27 = vpop.eup %956  ;;  %968 = vlog2.f32 %v357_v10  ;;  %v429_v0 = vadd.f32 1.0, %v1407_v54  ;;  %v433_v63 = vadd.f32 1.0, %v432_v26  ;;  %v459_v21 = vmul.f32 -0.5, %v1414_v24 }
  0x58   :  { %2007 = vst [vmem:[#allocation44_spill] sm:$0xff] %v1483_v27  ;;  %v1490_v59 = vpop.eup %958  ;;  %970 = vlog2.f32 %v366_v11  ;;  %v1497_v31 = vmul.f32 %v1403_v19, %v415_v29  ;;  %v435_v13 = vand.u32 2147483647, %v1407_v54  ;;  %v442_v10 = vadd.f32 1.0, %v441_v62 }
  0x59   :  { %2008 = vst [vmem:[#allocation45_spill] sm:$0xff] %v1490_v59  ;;  %v1494_v39 = vpop.eup %960  ;;  %972 = vlog2.f32 %v375_v20  ;;  %v2011_v27 = vand.u32 2147483647, %v1391_v25  ;;  %v2014_v26 = vand.u32 2147483647, %v1393_v57  ;;  %v1515_v19 = vmul.f32 %v1405_v23, %v424_v14 }
  0x5a   :  { %2009 = vst [vmem:[#allocation46_spill] sm:$0xff] %v1494_v39  ;;  %v1500_v37 = vpop.eup %962  ;;  %974 = vlog2.f32 %v384_v48  ;;  %v438_v62 = vadd.f32 1.0, %v1409_v2  ;;  %v468_v20 = vmul.f32 -0.5, %v1417_v7  ;;  %v447_v25 = vadd.f32 1.0, %v1412_v5 }
  0x5b   :  { %2010 = vst [vmem:[#allocation47_spill] sm:$0xff] %v1500_v37  ;;  %vm1504_vm0 = vcmp.lt.f32.partialorder %v2011_v27, 0.0004427343  ;;  %vm1510_vm1 = vcmp.lt.f32.partialorder %v2014_v26, 0.0004427343  ;;  %v1519_v29 = vpop.eup %964  ;;  %976 = vlog2.f32 %v393_v43  ;;  %v451_v57 = vadd.f32 1.0, %v450_v42 }
  0x5c   :  { %2017 = vst [vmem:[#allocation48_spill] sm:$0xff] %v1519_v29  ;;  %v444_v27 = vand.u32 2147483647, %v1409_v2  ;;  %v1523_v26 = vpop.eup %966  ;;  %v2019_v37 = vand.u32 2147483647, %v1395_v6  ;;  %978 = vlog2.f32 %v402_v49  ;;  %v1532_v14 = vmul.f32 %v1407_v54, %v433_v63 }
  0x5d   :  { %2018 = vst [vmem:[#allocation49_spill] sm:$0xff] %v1523_v26  ;;  %v460_v23 = vadd.f32 1.0, %v459_v21  ;;  %v477_v43 = vmul.f32 -0.5, %v1419_v12  ;;  %v969_v29 = vpop.eup %968  ;;  %v2022_v39 = vand.u32 2147483647, %v1397_v17  ;;  %980 = vlog2.f32 %v411_v46 }
  0x5e   :  { %vm1527_vm2 = vcmp.lt.f32.partialorder %v2019_v37, 0.0004427343  ;;  %vm1541_vm4 = vcmp.lt.f32.partialorder %v399_v40, 0.0004427343  ;;  %v1546_v49 = vmul.f32 %v1409_v2, %v442_v10  ;;  %v453_v54 = vand.u32 2147483647, %v1412_v5  ;;  %v971_v63 = vpop.eup %970 }
  0x5f   :  { %vm1537_vm3 = vcmp.lt.f32.partialorder %v2022_v39, 0.0004427343  ;;  %v456_v21 = vadd.f32 1.0, %v1414_v24  ;;  %v462_v37 = vand.u32 2147483647, %v1414_v24  ;;  %v465_v39 = vadd.f32 1.0, %v1417_v7  ;;  %v973_v40 = vpop.eup %972 }
  0x60   :  { %v469_v17 = vadd.f32 1.0, %v468_v20  ;;  %v486_v26 = vmul.f32 -0.5, %v1422_v47  ;;  %vm1553_vm5 = vcmp.lt.f32.partialorder %v408_v30, 0.0004427343  ;;  %vm1557_vm6 = vcmp.lt.f32.partialorder %v417_v15, 0.0004427343  ;;  %v975_v1 = vpop.eup %974 }
  0x61   :  { %v1562_v46 = vmul.f32 %v1412_v5, %v451_v57  ;;  %v471_v10 = vand.u32 2147483647, %v1417_v7  ;;  %v474_v55 = vadd.f32 1.0, %v1419_v12  ;;  %v495_v20 = vmul.f32 -0.5, %v1425_v22  ;;  %v977_v28 = vpop.eup %976 }
  0x62   :  { %982 = vlog2.f32 %v420_v18  ;;  %v1568_v30 = vmul.f32 %v1414_v24, %v460_v23  ;;  %v478_v45 = vadd.f32 1.0, %v477_v43  ;;  %v480_v15 = vand.u32 2147483647, %v1419_v12  ;;  %v979_v57 = vpop.eup %978 }
  0x63   :  { %v359_v50 = vmul.f32 0.6931472, %v969_v29  ;;  %v368_v53 = vmul.f32 0.6931472, %v971_v63  ;;  %984 = vlog2.f32 %v429_v0  ;;  %v483_v5 = vadd.f32 1.0, %v1422_v47  ;;  %v981_v43 = vpop.eup %980 }
  0x64   :  { %vm1572_vm7 = vcmp.lt.f32.partialorder %v426_v9, 0.0004427343  ;;  %986 = vlog2.f32 %v438_v62  ;;  %v1577_v18 = vmul.f32 %v1417_v7, %v469_v17  ;;  %v487_v24 = vadd.f32 1.0, %v486_v26 }
  0x65   :  { %v489_v23 = vand.u32 2147483647, %v1422_v47  ;;  %v377_v38 = vmul.f32 0.6931472, %v973_v40  ;;  %988 = vlog2.f32 %v447_v25  ;;  %v492_v29 = vadd.f32 1.0, %v1425_v22 }
  0x66   :  { %v496_v0 = vadd.f32 1.0, %v495_v20  ;;  %v386_v63 = vmul.f32 0.6931472, %v975_v1  ;;  %v395_v35 = vmul.f32 0.6931472, %v977_v28  ;;  %990 = vlog2.f32 %v456_v21 }
  0x67   :  { %vm1581_vm8 = vcmp.lt.f32.partialorder %v435_v13, 0.0004427343  ;;  %vm1585_vm9 = vcmp.lt.f32.partialorder %v444_v27, 0.0004427343  ;;  %v1590_v7 = vmul.f32 %v1419_v12, %v478_v45  ;;  %v365_v25 = vsel %vm1504_vm0, %v1437_v36, %v359_v50 }
  0x68   :  { %v374_v28 = vsel %vm1510_vm1, %v1447_v56, %v368_v53  ;;  %vm1598_vm10 = vcmp.lt.f32.partialorder %v453_v54, 0.0004427343  ;;  %992 = vlog2.f32 %v465_v39  ;;  %v504_v13 = vmul.f32 -0.5, %v1429_v58  ;;  %v983_v27 = vpop.eup %982 }
  0x69   :  { %v404_v26 = vmul.f32 0.6931472, %v979_v57  ;;  %v1603_v21 = vmul.f32 0.6931472, %v981_v43  ;;  %vm1605_vm11 = vcmp.lt.f32.partialorder %v462_v37, 0.0004427343  ;;  %v1610_v50 = vmul.f32 %v1422_v47, %v487_v24  ;;  %v985_v56 = vpop.eup %984 }
  0x6a   :  { %v498_v53 = vand.u32 2147483647, %v1425_v22  ;;  %v383_v12 = vsel %vm1527_vm2, %v1458_v44, %v377_v38  ;;  %vm1616_vm12 = vcmp.lt.f32.partialorder %v471_v10, 0.0004427343  ;;  %994 = vlog2.f32 %v474_v55  ;;  %v987_v54 = vpop.eup %986  ;;  %v2043_v38 = vld [vmem:[#allocation15_spill] sm:$0xff]  ;;  %v2044_v37 = vld [vmem:[#allocation16_spill] sm:$0xff] }
  0x6b   :  { %v1621_v59 = vmul.f32 %v1425_v22, %v496_v0  ;;  %v501_v11 = vadd.f32 1.0, %v1429_v58  ;;  %v392_v47 = vsel %vm1537_vm3, %v1465_v34, %v386_v63  ;;  %v401_v48 = vsel %vm1541_vm4, %v1476_v8, %v395_v35  ;;  %v989_v17 = vpop.eup %988  ;;  %v2047_v8 = vld [vmem:[#allocation17_spill] sm:$0xff] }
  0x6c   :  { %v645_v44 = vadd.f32 %v365_v25, %v2043_v38  ;;  %v646_v39 = vadd.f32 %v374_v28, %v2044_v37  ;;  %v422_v55 = vmul.f32 0.6931472, %v983_v27  ;;  %vm1632_vm13 = vcmp.lt.f32.partialorder %v480_v15, 0.0004427343  ;;  %v991_v42 = vpop.eup %990 }
  0x6d   :  { %996 = vlog2.f32 %v483_v5  ;;  %v505_v40 = vadd.f32 1.0, %v504_v13  ;;  %v507_v10 = vand.u32 2147483647, %v1429_v58  ;;  %v410_v34 = vsel %vm1553_vm5, %v1486_v16, %v404_v26  ;;  %v2084_v16 = vld [vmem:[#allocation30_spill] sm:$0xff] }
  0x6e   :  { %v419_v35 = vsel %vm1557_vm6, %v1497_v31, %v1603_v21  ;;  %998 = vlog2.f32 %v492_v29  ;;  %v647_v6 = vadd.f32 %v383_v12, %v2047_v8  ;;  %v993_v20 = vpop.eup %992  ;;  %v431_v15 = vmul.f32 0.6931472, %v985_v56  ;;  %v2052_v31 = vld [vmem:[#allocation18_spill] sm:$0xff]  ;;  %v2055_v21 = vld [vmem:[#allocation19_spill] sm:$0xff] }
  0x6f   :  { %v1645_v57 = vmul.f32 0.6931472, %v987_v54  ;;  %v510_v5 = vadd.f32 1.0, %v1434_v52  ;;  %v513_v24 = vmul.f32 -0.5, %v1434_v52  ;;  %v1649_v43 = vmul.f32 0.6931472, %v989_v17 }
  0x70   :  { %vm1651_vm14 = vcmp.lt.f32.partialorder %v489_v23, 0.0004427343  ;;  %vm1655_vm15 = vcmp.lt.f32.partialorder %v498_v53, 0.0004427343  ;;  %1000 = vlog2.f32 %v501_v11  ;;  %v648_v2 = vadd.f32 %v392_v47, %v2052_v31  ;;  %v995_v0 = vpop.eup %994  ;;  %v2059_v8 = vld [vmem:[#allocation22_spill] sm:$0xff] }
  0x71   :  { %v685_v29 = vadd.f32 %v646_v39, %v645_v44  ;;  %v428_v63 = vsel %vm1572_vm7, %v1515_v19, %v422_v55  ;;  %v1663_v25 = vmul.f32 0.6931472, %v991_v42  ;;  %v1666_v23 = vmul.f32 %v1429_v58, %v505_v40 }
  0x72   :  { %v516_v28 = vand.u32 2147483647, %v1434_v52  ;;  %v1669_v13 = vmul.f32 0.6931472, %v993_v20  ;;  %vm1671_vm0 = vcmp.lt.f32.partialorder %v507_v10, 0.0004427343  ;;  %v649_v53 = vadd.f32 %v401_v48, %v2055_v21 }
  0x73   :  { %v519_v26 = vadd.f32 1.0, %v1440_v60  ;;  %v686_v56 = vadd.f32 %v685_v29, %v647_v6  ;;  %v997_v33 = vpop.eup %996  ;;  %v437_v19 = vsel %vm1581_vm8, %v1532_v14, %v431_v15  ;;  %v446_v58 = vsel %vm1585_vm9, %v1546_v49, %v1645_v57  ;;  %v2065_v29 = vld [vmem:[#allocation24_spill] sm:$0xff] }
  0x74   :  { %1002 = vlog2.f32 %v510_v5  ;;  %v514_v12 = vadd.f32 1.0, %v513_v24  ;;  %v999_v11 = vpop.eup %998  ;;  %v455_v54 = vsel %vm1598_vm10, %v1562_v46, %v1649_v43  ;;  %v1688_v47 = vmul.f32 0.6931472, %v995_v0  ;;  %v2062_v43 = vld [vmem:[#allocation23_spill] sm:$0xff] }
  0x75   :  { %v650_v48 = vadd.f32 %v410_v34, %v1252_v3  ;;  %v687_v38 = vadd.f32 %v686_v56, %v648_v2  ;;  %v464_v14 = vsel %vm1605_vm11, %v1568_v30, %v1663_v25  ;;  %vm1695_vm1 = vcmp.lt.f32.partialorder %v516_v28, 0.0004427343  ;;  %v2058_v34 = vld [vmem:[#allocation39_spill] sm:$0xff] }
  0x76   :  { %v522_v9 = vmul.f32 -0.5, %v1440_v60  ;;  %v528_v62 = vadd.f32 1.0, %v1444_v4  ;;  %v1001_v1 = vpop.eup %1000  ;;  %v473_v3 = vsel %vm1616_vm12, %v1577_v18, %v1669_v13  ;;  %1004 = vlog2.f32 %v519_v26  ;;  %v2066_v26 = vld [vmem:[#allocation40_spill] sm:$0xff] }
  0x77   :  { %v651_v46 = vadd.f32 %v419_v35, %v1259_v41  ;;  %v688_v44 = vadd.f32 %v687_v38, %v649_v53  ;;  %v1706_v45 = vmul.f32 0.6931472, %v997_v33  ;;  %v1708_v30 = vmul.f32 0.6931472, %v999_v11  ;;  %v2067_v53 = vld [vmem:[#allocation25_spill] sm:$0xff] }
  0x78   :  { %v1711_v37 = vmul.f32 %v1434_v52, %v514_v12  ;;  %v531_v39 = vmul.f32 -0.5, %v1444_v4  ;;  %v482_v17 = vsel %vm1632_vm13, %v1590_v7, %v1688_v47  ;;  %v525_v18 = vand.u32 2147483647, %v1440_v60 }
  0x79   :  { %v652_v36 = vadd.f32 %v428_v63, %v1266_v61  ;;  %v689_v41 = vadd.f32 %v688_v44, %v650_v48  ;;  %v1720_v40 = vmul.f32 0.6931472, %v1001_v1  ;;  %v523_v10 = vadd.f32 1.0, %v522_v9  ;;  %v2069_v48 = vld [vmem:[#allocation26_spill] sm:$0xff] }
  0x7a   :  { %v1003_v55 = vpop.eup %1002  ;;  %1006 = vlog2.f32 %v528_v62  ;;  %v537_v52 = vadd.f32 1.0, %v1451_v51  ;;  %v534_v42 = vand.u32 2147483647, %v1444_v4  ;;  %v546_v35 = vadd.f32 1.0, %v2058_v34 }
  0x7b   :  { %v653_v6 = vadd.f32 %v437_v19, %v2059_v8  ;;  %v690_v22 = vadd.f32 %v689_v41, %v651_v46  ;;  %v491_v61 = vsel %vm1651_vm14, %v1610_v50, %v1706_v45  ;;  %v500_v7 = vsel %vm1655_vm15, %v1621_v59, %v1708_v30  ;;  %v2072_v45 = vld [vmem:[#allocation42_spill] sm:$0xff]  ;;  %v2073_v30 = vld [vmem:[#allocation27_spill] sm:$0xff] }
  0x7c   :  { %v532_v20 = vadd.f32 1.0, %v531_v39  ;;  %v540_v15 = vmul.f32 -0.5, %v1451_v51  ;;  %v1005_v57 = vpop.eup %1004  ;;  %v1735_v5 = vmul.f32 0.6931472, %v1003_v55  ;;  %vm1737_vm2 = vcmp.lt.f32.partialorder %v525_v18, 0.0004427343 }
  0x7d   :  { %v654_v31 = vadd.f32 %v446_v58, %v2062_v43  ;;  %v691_v2 = vadd.f32 %v690_v22, %v652_v36  ;;  %v509_v50 = vsel %vm1671_vm0, %v1666_v23, %v1720_v40  ;;  %v1747_v59 = vmul.f32 %v1440_v60, %v523_v10 }
  0x7e   :  { %1008 = vlog2.f32 %v537_v52  ;;  %v549_v32 = vmul.f32 -0.5, %v2058_v34  ;;  %vm1750_vm3 = vcmp.lt.f32.partialorder %v534_v42, 0.0004427343  ;;  %v655_v0 = vadd.f32 %v455_v54, %v2065_v29  ;;  %v2068_v54 = vld [vmem:[#allocation41_spill] sm:$0xff] }
  0x7f   :  { %1010 = vlog2.f32 %v546_v35  ;;  %v692_v63 = vadd.f32 %v691_v2, %v653_v6  ;;  %v1755_v28 = vmul.f32 0.6931472, %v1005_v57  ;;  %v1758_v13 = vmul.f32 %v1444_v4, %v532_v20  ;;  %v2079_v6 = vld [vmem:[#allocation43_spill] sm:$0xff]  ;;  %v2080_v20 = vld [vmem:[#allocation29_spill] sm:$0xff] }
  0x80   :  { %v1007_v25 = vpop.eup %1006  ;;  %v541_v23 = vadd.f32 1.0, %v540_v15  ;;  %v543_v60 = vand.u32 2147483647, %v1451_v51  ;;  %v518_v27 = vsel %vm1695_vm1, %v1711_v37, %v1735_v5  ;;  %v555_v21 = vadd.f32 1.0, %v2066_v26 }
  0x81   :  { %v656_v56 = vadd.f32 %v464_v14, %v2067_v53  ;;  %v693_v33 = vadd.f32 %v692_v63, %v654_v31  ;;  %v550_v19 = vadd.f32 1.0, %v549_v32  ;;  %v552_v58 = vand.u32 2147483647, %v2058_v34 }
  0x82   :  { %v558_v12 = vmul.f32 -0.5, %v2066_v26  ;;  %v561_v4 = vand.u32 2147483647, %v2066_v26  ;;  %v1770_v11 = vmul.f32 0.6931472, %v1007_v25  ;;  %v564_v47 = vadd.f32 1.0, %v2068_v54 }
  0x83   :  { %v657_v38 = vadd.f32 %v473_v3, %v2069_v48  ;;  %v694_v49 = vadd.f32 %v693_v33, %v655_v0  ;;  %v527_v14 = vsel %vm1737_vm2, %v1747_v59, %v1755_v28  ;;  %v1779_v62 = vmul.f32 %v1451_v51, %v541_v23  ;;  %v2083_v59 = vld [vmem:[#allocation44_spill] sm:$0xff]  ;;  %v2085_v23 = vld [vmem:[#allocation45_spill] sm:$0xff] }
  0x84   :  { %v1009_v9 = vpop.eup %1008  ;;  %vm1781_vm4 = vcmp.lt.f32.partialorder %v543_v60, 0.0004427343  ;;  %v567_v46 = vmul.f32 -0.5, %v2068_v54  ;;  %1012 = vlog2.f32 %v555_v21  ;;  %v573_v3 = vadd.f32 1.0, %v2072_v45 }
  0x85   :  { %v1011_v44 = vpop.eup %1010  ;;  %v658_v37 = vadd.f32 %v482_v17, %v2073_v30  ;;  %v695_v39 = vadd.f32 %v694_v49, %v656_v56  ;;  %v1789_v18 = vmul.f32 %v2058_v34, %v550_v19  ;;  %vm1791_vm5 = vcmp.lt.f32.partialorder %v552_v58, 0.0004427343  ;;  %v2078_v17 = vld [vmem:[#allocation28_spill] sm:$0xff] }
  0x86   :  { %v559_v51 = vadd.f32 1.0, %v558_v12  ;;  %v570_v41 = vand.u32 2147483647, %v2068_v54  ;;  %v536_v55 = vsel %vm1750_vm3, %v1758_v13, %v1770_v11  ;;  %vm1800_vm6 = vcmp.lt.f32.partialorder %v561_v4, 0.0004427343  ;;  %v2091_v4 = vld [vmem:[#allocation46_spill] sm:$0xff] }
  0x87   :  { %1014 = vlog2.f32 %v564_v47  ;;  %v659_v10 = vadd.f32 %v491_v61, %v2078_v17  ;;  %v696_v52 = vadd.f32 %v695_v39, %v657_v38  ;;  %v539_v42 = vmul.f32 0.6931472, %v1009_v9 }
  0x88   :  { %v548_v34 = vmul.f32 0.6931472, %v1011_v44  ;;  %v568_v35 = vadd.f32 1.0, %v567_v46  ;;  %v576_v8 = vmul.f32 -0.5, %v2072_v45  ;;  %1016 = vlog2.f32 %v573_v3  ;;  %v2094_v46 = vld [vmem:[#allocation11_spill] sm:$0xff] }
  0x89   :  { %v582_v22 = vadd.f32 1.0, %v2079_v6  ;;  %v660_v15 = vadd.f32 %v500_v7, %v2080_v20  ;;  %v697_v57 = vadd.f32 %v696_v52, %v658_v37  ;;  %v560_v5 = vmul.f32 %v2066_v26, %v559_v51  ;;  %v2086_v26 = vld [vmem:[#allocation9_spill] sm:$0xff]  ;;  %v2096_v51 = vld [vmem:[#allocation31_spill] sm:$0xff] }
  0x8a   :  { %vm1809_vm7 = vcmp.lt.f32.partialorder %v570_v41, 0.0004427343  ;;  %v579_v61 = vand.u32 2147483647, %v2072_v45  ;;  %v585_v43 = vmul.f32 -0.5, %v2079_v6  ;;  %v1013_v31 = vpop.eup %1012  ;;  %v591_v32 = vadd.f32 1.0, %v2083_v59 }
  0x8b   :  { %v588_v2 = vand.u32 2147483647, %v2079_v6  ;;  %v661_v29 = vadd.f32 %v509_v50, %v2084_v16  ;;  %v698_v0 = vadd.f32 %v697_v57, %v659_v10  ;;  %v545_v7 = vsel %vm1781_vm4, %v1779_v62, %v539_v42  ;;  %v2093_v62 = vld [vmem:[#allocation47_spill] sm:$0xff] }
  0x8c   :  { %v554_v63 = vsel %vm1791_vm5, %v1789_v18, %v548_v34  ;;  %v569_v25 = vmul.f32 %v2068_v54, %v568_v35  ;;  %v577_v28 = vadd.f32 1.0, %v576_v8  ;;  %1018 = vlog2.f32 %v582_v22  ;;  %v2092_v54 = vld [vmem:[#allocation10_spill] sm:$0xff]  ;;  %v2099_v34 = vld [vmem:[#allocation49_spill] sm:$0xff]  ;;  %v2100_v8 = vld [vmem:[#allocation32_spill] sm:$0xff] }
  0x8d   :  { %v1015_v13 = vpop.eup %1014  ;;  %v600_v60 = vadd.f32 1.0, %v2085_v23  ;;  %v662_v21 = vadd.f32 %v518_v27, %v2086_v26  ;;  %v699_v53 = vadd.f32 %v698_v0, %v660_v15  ;;  %v557_v50 = vmul.f32 0.6931472, %v1013_v31 }
  0x8e   :  { %vm1827_vm8 = vcmp.lt.f32.partialorder %v579_v61, 0.0004427343  ;;  %v586_v33 = vadd.f32 1.0, %v585_v43  ;;  %v594_v19 = vmul.f32 -0.5, %v2083_v59  ;;  %v1017_v58 = vpop.eup %1016  ;;  %vm1832_vm9 = vcmp.lt.f32.partialorder %v588_v2, 0.0004427343 }
  0x8f   :  { %1020 = vlog2.f32 %v591_v32  ;;  %v609_v11 = vadd.f32 1.0, %v2091_v4  ;;  %v663_v47 = vadd.f32 %v527_v14, %v2092_v54  ;;  %v700_v27 = vadd.f32 %v699_v53, %v661_v29  ;;  %v2101_v43 = vld [vmem:[#allocation8_spill] sm:$0xff] }
  0x90   :  { %v566_v48 = vmul.f32 0.6931472, %v1015_v13  ;;  %v578_v38 = vmul.f32 %v2072_v45, %v577_v28  ;;  %v597_v49 = vand.u32 2147483647, %v2083_v59  ;;  %v603_v9 = vmul.f32 -0.5, %v2085_v23  ;;  %v2095_v45 = vld [vmem:[#allocation48_spill] sm:$0xff] }
  0x91   :  { %1022 = vlog2.f32 %v600_v60  ;;  %v618_v1 = vadd.f32 1.0, %v2093_v62  ;;  %v664_v44 = vadd.f32 %v536_v55, %v2094_v46  ;;  %v701_v3 = vadd.f32 %v700_v27, %v662_v21  ;;  %v132_v27 = vld [vmem:[#allocation4 + $0xf8] sm:$0xff] }
  0x92   :  { %v563_v30 = vsel %vm1800_vm6, %v560_v5, %v557_v50  ;;  %v575_v37 = vmul.f32 0.6931472, %v1017_v58  ;;  %v587_v14 = vmul.f32 %v2079_v6, %v586_v33  ;;  %v595_v39 = vadd.f32 1.0, %v594_v19  ;;  %v1019_v18 = vpop.eup %1018  ;;  %v2105_v33 = vld [vmem:[#allocation34_spill] sm:$0xff] }
  0x93   :  { %1024 = vlog2.f32 %v609_v11  ;;  %v627_v36 = vadd.f32 1.0, %v2095_v45  ;;  %v665_v41 = vadd.f32 %v545_v7, %v2096_v51  ;;  %v702_v17 = vadd.f32 %v701_v3, %v663_v47  ;;  %v1032_v51 = vld [vmem:[#allocation2 + $0xf8] sm:$0xff] }
  0x94   :  { %v572_v10 = vsel %vm1809_vm7, %v569_v25, %v566_v48  ;;  %vm1850_vm10 = vcmp.lt.f32.partialorder %v597_v49, 0.0004427343  ;;  %v604_v40 = vadd.f32 1.0, %v603_v9  ;;  %v612_v52 = vmul.f32 -0.5, %v2091_v4  ;;  %v2108_v49 = vld [vmem:[#allocation35_spill] sm:$0xff] }
  0x95   :  { %v1021_v42 = vpop.eup %1020  ;;  %1026 = vlog2.f32 %v618_v1  ;;  %v636_v35 = vadd.f32 1.0, %v2099_v34  ;;  %v666_v6 = vadd.f32 %v554_v63, %v2100_v8  ;;  %v703_v22 = vadd.f32 %v702_v17, %v664_v44  ;;  %v2102_v63 = vld [vmem:[#allocation33_spill] sm:$0xff] }
  0x96   :  { %v584_v20 = vmul.f32 0.6931472, %v1019_v18  ;;  %v596_v15 = vmul.f32 %v2083_v59, %v595_v39  ;;  %v606_v57 = vand.u32 2147483647, %v2085_v23  ;;  %v621_v5 = vmul.f32 -0.5, %v2093_v62  ;;  %v2111_v39 = vld [vmem:[#allocation36_spill] sm:$0xff] }
  0x97   :  { %v1023_v24 = vpop.eup %1022  ;;  %v581_v61 = vsel %vm1827_vm8, %v578_v38, %v575_v37  ;;  %1028 = vlog2.f32 %v627_v36  ;;  %v667_v31 = vadd.f32 %v563_v30, %v2101_v43  ;;  %v704_v2 = vadd.f32 %v703_v22, %v665_v41 }
  0x98   :  { %v593_v32 = vmul.f32 0.6931472, %v1021_v42  ;;  %v613_v16 = vadd.f32 1.0, %v612_v52  ;;  %v615_v29 = vand.u32 2147483647, %v2091_v4  ;;  %v630_v0 = vmul.f32 -0.5, %v2095_v45 }
  0x99   :  { %v1025_v7 = vpop.eup %1024  ;;  %v605_v59 = vmul.f32 %v2085_v23, %v604_v40  ;;  %1030 = vlog2.f32 %v636_v35  ;;  %v668_v25 = vadd.f32 %v572_v10, %v2102_v63  ;;  %v705_v28 = vadd.f32 %v704_v2, %v666_v6  ;;  %v2113_v40 = vld [vmem:[#allocation12_spill] sm:$0xff]  ;;  %v2115_v35 = vld [vmem:[#allocation37_spill] sm:$0xff] }
  0x9a   :  { %v590_v13 = vsel %vm1832_vm9, %v587_v14, %v584_v20  ;;  %v602_v60 = vmul.f32 0.6931472, %v1023_v24  ;;  %v622_v26 = vadd.f32 1.0, %v621_v5  ;;  %v639_v21 = vmul.f32 -0.5, %v2099_v34  ;;  %v2117_v5 = vld [vmem:[#allocation13_spill] sm:$0xff] }
  0x9b   :  { %v1027_v53 = vpop.eup %1026  ;;  %vm1870_vm11 = vcmp.lt.f32.partialorder %v606_v57, 0.0004427343  ;;  %v624_v56 = vand.u32 2147483647, %v2093_v62  ;;  %v669_v23 = vadd.f32 %v581_v61, %v2105_v33  ;;  %v706_v19 = vadd.f32 %v705_v28, %v667_v31  ;;  %v2116_v57 = vld [vmem:[#allocation21_spill] sm:$0xff] }
  0x9c   :  { %v599_v58 = vsel %vm1850_vm10, %v596_v15, %v593_v32  ;;  %v611_v11 = vmul.f32 0.6931472, %v1025_v7  ;;  %v614_v12 = vmul.f32 %v2091_v4, %v613_v16  ;;  %v631_v54 = vadd.f32 1.0, %v630_v0  ;;  %v2120_v32 = vld [vmem:[#allocation14_spill] sm:$0xff] }
  0x9d   :  { %v1029_v47 = vpop.eup %1028  ;;  %vm1879_vm12 = vcmp.lt.f32.partialorder %v615_v29, 0.0004427343  ;;  %v633_v38 = vand.u32 2147483647, %v2095_v45  ;;  %v670_v9 = vadd.f32 %v590_v13, %v2108_v49  ;;  %v707_v1 = vadd.f32 %v706_v19, %v668_v25 }
  0x9e   :  { %v608_v46 = vsel %vm1870_vm11, %v605_v59, %v602_v60  ;;  %v620_v44 = vmul.f32 0.6931472, %v1027_v53  ;;  %v623_v3 = vmul.f32 %v2093_v62, %v622_v26  ;;  %v640_v30 = vadd.f32 1.0, %v639_v21  ;;  %v2112_v62 = vld [vmem:[#allocation20_spill] sm:$0xff] }
  0x9f   :  { %v1031_v4 = vpop.eup %1030  ;;  %vm1888_vm13 = vcmp.lt.f32.partialorder %v624_v56, 0.0004427343  ;;  %v642_v14 = vand.u32 2147483647, %v2099_v34  ;;  %v671_v18 = vadd.f32 %v599_v58, %v2111_v39  ;;  %v708_v36 = vadd.f32 %v707_v1, %v669_v23 }
  0xa0   :  { %v196_v41 = vmul.f32 %v1032_v51, %v132_v27  ;;  %v617_v17 = vsel %vm1879_vm12, %v614_v12, %v611_v11  ;;  %v629_v10 = vmul.f32 0.6931472, %v1029_v47  ;;  %v632_v55 = vmul.f32 %v2095_v45, %v631_v54  ;;  %v2119_v45 = vld [vmem:[#allocation38_spill] sm:$0xff] }
  0xa1   :  { %v2114_v52 = vmax.f32 %v2113_v40, 0.0  ;;  %vm634_vm14 = vcmp.lt.f32.partialorder %v633_v38, 0.0004427343  ;;  %v672_v8 = vadd.f32 %v608_v46, %v2115_v35  ;;  %v709_v6 = vadd.f32 %v708_v36, %v670_v9 }
  0xa2   :  { %v626_v22 = vsel %vm1888_vm13, %v623_v3, %v620_v44  ;;  %v638_v20 = vmul.f32 0.6931472, %v1031_v4  ;;  %v641_v15 = vmul.f32 %v2099_v34, %v640_v30  ;;  %v2118_v24 = vmax.f32 %v2117_v5, 0.0 }
  0xa3   :  { %v226_v42 = vsub.f32 %v2114_v52, %v2112_v62  ;;  %vm643_vm15 = vcmp.lt.f32.partialorder %v642_v14, 0.0004427343  ;;  %v673_v43 = vadd.f32 %v617_v17, %v2119_v45  ;;  %v710_v31 = vadd.f32 %v709_v6, %v671_v18 }
  0xa4   :  { %v227_v61 = vsub.f32 %v2118_v24, %v2116_v57  ;;  %v635_v2 = vsel %vm634_vm14, %v632_v55, %v629_v10  ;;  %v2121_v16 = vmax.f32 %v2120_v32, 0.0  ;;  %v644_v59 = vsel %vm643_vm15, %v641_v15, %v638_v20 }
  0xa5   :  { %v674_v0 = vadd.f32 %v626_v22, %v226_v42  ;;  %v711_v7 = vadd.f32 %v710_v31, %v672_v8 }
  0xa6   :  { %v228_v29 = vsub.f32 %v2121_v16, %v196_v41  ;;  %v675_v63 = vadd.f32 %v635_v2, %v227_v61 }
  0xa7   :  { %v712_v25 = vadd.f32 %v711_v7, %v673_v43 }
  0xa8   :  { %v676_v28 = vadd.f32 %v644_v59, %v228_v29 }
  0xa9   :  { %v713_v13 = vadd.f32 %v712_v25, %v674_v0 }
  0xab   :  { %v714_v34 = vadd.f32 %v713_v13, %v675_v63 }
  0xad   :  { %v715_v60 = vadd.f32 %v714_v34, %v676_v28 }
  0xaf   :  { %718 = vst [vmem:[%s1915_s2] sm:$0xff] %v715_v60 }
  0xb0   :  { %893 = vsyncpa [#allocation3], 1 }
  0xb1   :  { %894 = vsyncpa [#allocation5], 1 }

</bundles_post_ra>
